<compile_context>
chip_gen: v7x
topology: tpu7x:2x2x1
jax: 0.10.0
libtpu: 0.0.40
codegen_flags: <defaults>
</compile_context>

<pallas_src>
import functools

import jax
import jax.numpy as jnp
from jax import lax
from jax.experimental import pallas as pl
from jax.experimental.pallas import tpu as pltpu


def _round_up(v: int, mult: int) -> int:
    return (v + mult - 1) // mult * mult


def _tpu_vmem_capacity_bytes() -> int:
    """Per-TensorCore VMEM capacity; conservative (v7x = 64 MiB) on failure."""
    try:
        return int(pltpu.get_tpu_info().vmem_capacity_bytes)
    except Exception:
        return 64 * 2**20


def _mxu_lane_granularity() -> int:
    """256 on v6e/v7x (2x256x256 MXUs), 128 on v2-v5 (128x128 MXUs)."""
    try:
        kind = jax.devices()[0].device_kind.lower()
    except Exception:
        return 128
    for old in ("v2", "v3", "v4", "v5"):
        if old in kind:
            return 128
    return 256


@functools.lru_cache(maxsize=None)
def _supports_single_buffered_constants() -> bool:
    """Can BlockSpec take pipeline_mode=pl.Buffered(buffer_count=1)?"""
    if not hasattr(pl, "Buffered"):
        return False
    try:
        pl.BlockSpec((8, 128), lambda i: (0, 0),
                     pipeline_mode=pl.Buffered(buffer_count=1))
    except TypeError:
        return False
    return True


def _thought_kernel(x_ref, wt_ref, b_ref, o_ref, *, steps: int):
    # x_ref:  (tm, H_pad)      tile of the flattened input (native dtype)
    # wt_ref: (H_pad, H_pad)   transposed Linear weight (in, out), MXU dtype
    # b_ref:  (1, H_pad)       bias (f32)
    # o_ref:  (tm, H_pad)      output tile
    x0 = x_ref[...]                      # residual kept in input dtype (upcast only at the end)
    wt = wt_ref[...]                     # MXU operand dtype (bf16 by default)
    b = b_ref[...].astype(jnp.float32)   # (1, H_pad) row: cheap sublane broadcast, no full-tile copy

    def one_step(h):
        acc = jnp.dot(h.astype(wt.dtype), wt, preferred_element_type=jnp.float32)
        return jnp.tanh(acc + b)         # bias add -> VPU, tanh -> EUP, acc stays f32

    # NOTE: for very small hidden sizes (H <= ~256 on v6e/v7x) the EUP tanh can
    # dominate; interleaving two independent row half-tiles would hide it.  Not
    # implemented here since typical encoder hidden sizes are MXU-bound.
    if steps <= 8:
        # Fully unroll short static thought loops: lets the LLO scheduler
        # overlap MXU pushes, EUP tanh and VPU bias-adds across iterations.
        h = x0
        for _ in range(steps):
            h = one_step(h)
    else:
        # Modest unroll: bounds code size / live f32 temporaries for big step
        # counts; runtime is unaffected since the body is MXU-bound.
        h = lax.fori_loop(0, steps, lambda _, hh: one_step(hh),
                          x0.astype(jnp.float32), unroll=2)

    o_ref[...] = (h.astype(jnp.float32) + x0.astype(jnp.float32)).astype(o_ref.dtype)


def thought_layer(x, weight, bias, *, num_thought_steps: int,
                  tile_m: int | None = None, mxu_dtype=jnp.bfloat16):
    """ThoughtLayer forward.

    x:      (batch, seq, hidden)
    weight: (hidden, hidden)  torch nn.Linear convention (out_features, in_features)
    bias:   (hidden,)
    mxu_dtype: dtype used for the MXU operands (bf16 by default; pass
               jnp.float32 for a bit-faithful-but-slow f32 matmul path).
    Returns (batch, seq, hidden), same dtype as x.  Accumulation is always f32.
    """
    batch, seq, hidden = x.shape
    m = batch * seq
    itemsize = jnp.dtype(x.dtype).itemsize
    mxu_itemsize = jnp.dtype(mxu_dtype).itemsize

    # ---- chip-aware padding / tiling --------------------------------------
    vmem_cap = _tpu_vmem_capacity_bytes()
    big_vmem = vmem_cap >= 96 * 2**20          # v5e/v6e: 128 MiB; v7x: 64 MiB per TC

    h_pad = _round_up(hidden, 128)             # lane-dense last dim
    if _mxu_lane_granularity() == 256 and h_pad > 256 and h_pad % 256 != 0:
        h_pad = _round_up(h_pad, 256)          # avoid partial 256x256 MXU tiles (v6e/v7x)

    sublane = 8 * max(1, 4 // itemsize)        # 8 (f32), 16 (bf16), 32 (int8)
    if tile_m is None:
        if big_vmem:
            tile_m = 512 if itemsize <= 2 else 256
        else:                                  # v7x: 64 MiB per TC
            tile_m = 128 if h_pad >= 2048 else 256
    tm = max(sublane, min(_round_up(tile_m, sublane), _round_up(m, sublane)))

    use_single_buffer = _supports_single_buffered_constants()
    w_buffers = 1 if use_single_buffer else 2
    budget = int(0.85 * vmem_cap)

    def vmem_need(tm_: int, wbufs: int) -> int:
        w_bytes = wbufs * h_pad * h_pad * mxu_itemsize        # resident weight buffer(s)
        b_bytes = wbufs * h_pad * 4                           # bias block(s)
        io_bytes = 2 * 2 * tm_ * h_pad * itemsize             # x/out tiles, double-buffered
        work_bytes = 6 * tm_ * h_pad * 4                      # ~6 live f32-equiv (tm,H) temps
        return w_bytes + b_bytes + io_bytes + work_bytes

    if vmem_need(sublane, w_buffers) > budget:
        # TODO(synk): stream the weight as (H_pad, tn) column panels from HBM
        # (memory_space=pl.ANY + pltpu.emit_pipeline) when it cannot stay VMEM-resident.
        raise ValueError(
            f"hidden={hidden} is too large for a VMEM-resident weight on this chip "
            f"({vmem_cap >> 20} MiB VMEM); the streaming path is not implemented.")

    # Shrink tm until the whole working set fits the chip's VMEM budget.
    while tm > sublane and vmem_need(tm, w_buffers) > budget:
        tm = max(sublane, _round_up(tm // 2, sublane))

    m_pad = _round_up(m, tm)
    # Guarantee >= 2 grid steps on the parallel M axis so v7x's two TensorCores
    # can both get work (neutral on single-TC v5e/v6e).
    while m_pad // tm < 2 and tm > sublane:
        tm = max(sublane, _round_up(tm // 2, sublane))
        m_pad = _round_up(m, tm)

    vmem_limit = int(min(0.9 * vmem_cap,
                         max(32 * 2**20, 2 * vmem_need(tm, w_buffers))))

    # ---- operand preparation ----------------------------------------------
    x2d = jnp.pad(x.reshape(m, hidden), ((0, m_pad - m), (0, h_pad - hidden)))
    # Pre-transpose to (in, out) and force the MXU dtype (bf16 by default).
    wt = jnp.pad(weight.T, ((0, h_pad - hidden), (0, h_pad - hidden))).astype(mxu_dtype)
    b2d = jnp.pad(bias.astype(jnp.float32), (0, h_pad - hidden)).reshape(1, h_pad)

    cost = pl.CostEstimate(
        flops=2 * num_thought_steps * m_pad * h_pad * h_pad,
        transcendentals=num_thought_steps * m_pad * h_pad,
        bytes_accessed=int(x2d.size * itemsize
                           + wt.size * mxu_itemsize
                           + b2d.size * 4
                           + m_pad * h_pad * itemsize),
    )

    kernel = functools.partial(_thought_kernel, steps=num_thought_steps)

    def _build(const_buffered: bool):
        const_kw = ({"pipeline_mode": pl.Buffered(buffer_count=1)}
                    if const_buffered else {})
        grid_spec = pltpu.PrefetchScalarGridSpec(
            num_scalar_prefetch=0,
            grid=(m_pad // tm,),
            in_specs=[
                pl.BlockSpec((tm, h_pad), lambda i: (i, 0)),
                pl.BlockSpec((h_pad, h_pad), lambda i: (0, 0), **const_kw),
                pl.BlockSpec((1, h_pad), lambda i: (0, 0), **const_kw),
            ],
            out_specs=pl.BlockSpec((tm, h_pad), lambda i: (i, 0)),
        )
        return pl.pallas_call(
            kernel,
            out_shape=jax.ShapeDtypeStruct((m_pad, h_pad), x.dtype),
            grid_spec=grid_spec,
            compiler_params=pltpu.CompilerParams(
                dimension_semantics=("parallel",),
                vmem_limit_bytes=vmem_limit,
            ),
            cost_estimate=cost,
        )

    if use_single_buffer:
        try:
            out2d = _build(True)(x2d, wt, b2d)
        except (TypeError, NotImplementedError, ValueError, pltpu.LoweringException):
            # This jax build accepts pipeline_mode on BlockSpec but rejects it in
            # the TPU lowering.  Fall back to default (double) buffering of the
            # constants only if the doubled weight still fits the VMEM budget —
            # never a silent OOM / perf cliff.
            if vmem_need(tm, 2) > budget:
                raise
            out2d = _build(False)(x2d, wt, b2d)
    else:
        out2d = _build(False)(x2d, wt, b2d)

    return out2d[:m, :hidden].reshape(batch, seq, hidden)


def _reference(x, weight, bias, num_thought_steps):
    orig = x
    h = x
    for _ in range(num_thought_steps):
        h = jnp.tanh(h @ weight.T + bias)
    return h + orig


if __name__ == "__main__":
    # Small config: batch=2, seq=8, hidden=32, num_thought_steps=3
    batch, seq, hidden = 2, 8, 32
    num_thought_steps = 3

    key = jax.random.PRNGKey(0)
    kx, kw, kb = jax.random.split(key, 3)

    x = jax.random.normal(kx, (batch, seq, hidden), dtype=jnp.float32)
    # Deterministic synthetic Linear params (torch-style (out, in) weight).
    bound = 1.0 / float(hidden) ** 0.5
    weight = jax.random.uniform(
        kw, (hidden, hidden), minval=-bound, maxval=bound, dtype=jnp.float32)
    bias = jax.random.uniform(
        kb, (hidden,), minval=-bound, maxval=bound, dtype=jnp.float32)

    ref = _reference(x, weight, bias, num_thought_steps)

    # 1) Exact-path check: f32 MXU operands match the f32 reference tightly.
    out_f32 = jax.block_until_ready(
        thought_layer(x, weight, bias, num_thought_steps=num_thought_steps,
                      mxu_dtype=jnp.float32))
    assert out_f32.shape == (batch, seq, hidden)
    assert jnp.allclose(out_f32, ref, atol=1e-5, rtol=1e-5), "f32 path mismatch vs reference"

    # 2) Production path: bf16 MXU operands, f32 accumulation (looser tolerance).
    out_bf16 = jax.block_until_ready(
        thought_layer(x, weight, bias, num_thought_steps=num_thought_steps))
    assert out_bf16.shape == (batch, seq, hidden)
    assert jnp.allclose(out_bf16, ref, atol=3e-2, rtol=3e-2), "bf16 path mismatch vs reference"

    print("KERNEL_OK")
</pallas_src>

<mosaic_0001>
module attributes {stable_mosaic.version = 11 : i64} {
  func.func @_thought_kernel(%arg0: i32, %arg1: memref<8x128xf32, #tpu.memory_space<vmem>>, %arg2: memref<128x128xf32, #tpu.memory_space<vmem>>, %arg3: memref<1x128xf32, #tpu.memory_space<vmem>>, %arg4: memref<8x128xf32, #tpu.memory_space<vmem>>) attributes {dimension_semantics = [#tpu.dimension_semantics<parallel>], iteration_bounds = array<i64: 2>, scalar_prefetch = 0 : i64, scratch_operands = 0 : i64, tpu.core_type = #tpu.core_type<tc>, window_params = [{transform_indices = @transform_0, window_bounds = array<i64: 8, 128>}, {pipeline_mode = #tpu.pipeline_mode<synchronous>, transform_indices = @transform_1, window_bounds = array<i64: 128, 128>}, {pipeline_mode = #tpu.pipeline_mode<synchronous>, transform_indices = @transform_2, window_bounds = array<i64: 1, 128>}, {transform_indices = @transform_3, window_bounds = array<i64: 8, 128>}]} {
    %c0 = arith.constant 0 : index
    %c0_0 = arith.constant 0 : index
    %0 = vector.load %arg1[%c0, %c0_0] : memref<8x128xf32, #tpu.memory_space<vmem>>, vector<8x128xf32>
    %c0_1 = arith.constant 0 : index
    %c0_2 = arith.constant 0 : index
    %1 = vector.load %arg2[%c0_1, %c0_2] : memref<128x128xf32, #tpu.memory_space<vmem>>, vector<128x128xf32>
    %c0_3 = arith.constant 0 : index
    %c0_4 = arith.constant 0 : index
    %2 = vector.load %arg3[%c0_3, %c0_4] : memref<1x128xf32, #tpu.memory_space<vmem>>, vector<1x128xf32>
    %cst = arith.constant dense<0.000000e+00> : vector<8x128xf32>
    %3 = tpu.matmul %0, %1, %cst {dimension_numbers = #tpu.dot_dimension_numbers<[1], [0], [0], [1], [0, 0, 1, 1], [], []>} : vector<8x128xf32>, vector<128x128xf32>, vector<8x128xf32> -> vector<8x128xf32>
    %4 = vector.broadcast %2 : vector<1x128xf32> to vector<8x128xf32>
    %5 = arith.addf %3, %4 : vector<8x128xf32>
    %6 = math.tanh %5 : vector<8x128xf32>
    %cst_5 = arith.constant dense<0.000000e+00> : vector<8x128xf32>
    %7 = tpu.matmul %6, %1, %cst_5 {dimension_numbers = #tpu.dot_dimension_numbers<[1], [0], [0], [1], [0, 0, 1, 1], [], []>} : vector<8x128xf32>, vector<128x128xf32>, vector<8x128xf32> -> vector<8x128xf32>
    %8 = vector.broadcast %2 : vector<1x128xf32> to vector<8x128xf32>
    %9 = arith.addf %7, %8 : vector<8x128xf32>
    %10 = math.tanh %9 : vector<8x128xf32>
    %cst_6 = arith.constant dense<0.000000e+00> : vector<8x128xf32>
    %11 = tpu.matmul %10, %1, %cst_6 {dimension_numbers = #tpu.dot_dimension_numbers<[1], [0], [0], [1], [0, 0, 1, 1], [], []>} : vector<8x128xf32>, vector<128x128xf32>, vector<8x128xf32> -> vector<8x128xf32>
    %12 = vector.broadcast %2 : vector<1x128xf32> to vector<8x128xf32>
    %13 = arith.addf %11, %12 : vector<8x128xf32>
    %14 = math.tanh %13 : vector<8x128xf32>
    %15 = arith.addf %14, %0 : vector<8x128xf32>
    %c0_7 = arith.constant 0 : index
    %c0_8 = arith.constant 0 : index
    %16 = vector.load %arg4[%c0_7, %c0_8] : memref<8x128xf32, #tpu.memory_space<vmem>>, vector<8x128xf32>
    tpu.vector_store %arg4[%c0_7, %c0_8], %15 {strides = array<i32>} : memref<8x128xf32, #tpu.memory_space<vmem>>, vector<8x128xf32>,
    return
  }
  func.func @transform_0(%arg0: i32) -> (i32, i32) {
    %c0_i32 = arith.constant 0 : i32
    %c0_i32_0 = arith.constant 0 : i32
    return %arg0, %c0_i32 : i32, i32
  }
  func.func @transform_1(%arg0: i32) -> (i32, i32) {
    %c0_i32 = arith.constant 0 : i32
    %c0_i32_0 = arith.constant 0 : i32
    %c0_i32_1 = arith.constant 0 : i32
    return %c0_i32, %c0_i32_0 : i32, i32
  }
  func.func @transform_2(%arg0: i32) -> (i32, i32) {
    %c0_i32 = arith.constant 0 : i32
    %c0_i32_0 = arith.constant 0 : i32
    %c0_i32_1 = arith.constant 0 : i32
    return %c0_i32, %c0_i32_0 : i32, i32
  }
  func.func @transform_3(%arg0: i32) -> (i32, i32) {
    %c0_i32 = arith.constant 0 : i32
    %c0_i32_0 = arith.constant 0 : i32
    return %arg0, %c0_i32 : i32, i32
  }
}

</mosaic_0001>

<bundles_post_ra>
// kernel: tpu_custom_call.1
= control target key start
LH: loop header
LB: loop body
LE: loop exit
PB: predicated region body
PF: predicated region fallthrough
CT: control target
= control target key end

     0   :  { %8 = vsyncpa [#allocation3], 0  ;;  %s1236_s0 = inlined_call_operand.hbm [shape: f32[16,128], index: 0, kind: input, shape index: {}]   ;;  %s1237_s1 = inlined_call_operand.hbm [shape: f32[128,128], index: 1, kind: input, shape index: {}]   ;;  %s1238_s2 = inlined_call_operand.vmem [shape: f32[1,128], index: 2, kind: input, shape index: {}]   ;;  %s1239_s3 = inlined_call_operand.hbm [shape: f32[16,128], index: 3, kind: output, shape index: {}]  }
   0x1   :  { %10 = vsyncpa [#allocation3 + $0x1], 0 }
   0x2   :  { %11 = vsyncpa [#allocation6], 0 }
   0x3   :  { %12 = vsyncpa [#allocation4], 0 }
   0x4   :  { %14 = vsyncpa [#allocation4 + $0x1], 0  ;;  %s1003_s12 = smov 0   ;;  %s1005_s13 = smov 0  }
   0x5   :  { %s1007_s14 = smov 0   ;;  %s1009_s15 = smov 0  }
   0x6 LB: > { %s1024_s16 = sadd.s32 4294967295, %s973_s15   ;;  %s534_s17 = sadd.s32 4294967294, %s973_s15   ;;  %s973_s15 = sphi %s1009_s15, %s1259_s15   ;;  %s969_s14 = sphi %s1007_s14, %s1258_s14   ;;  %s965_s13 = sphi %s1005_s13, %s1257_s13   ;;  %s961_s12 = sphi %s1003_s12, %s1256_s12  }
   0x7   : > { %p40_p0 = scmp.ne.s32.totalorder %s965_s13, %s961_s12  ;;  %p1240_p1 = scmp.eq.s32.totalorder %s1024_s16, 0 }
   0x8   : > { %p112_p3 = scmp.eq.s32.totalorder %s534_s17, 1  ;;  %p535_p5 = scmp.ge.s32.totalorder %s973_s15, 1 }
   0x9   : > { %p1033_p4 = por %p1240_p1, %p40_p0  ;;  %p119_p7 = scmp.lt.s32.totalorder %s973_s15, 3 }
   0xa   : > { %p1038_p6 = por %p112_p3, %p40_p0  ;;  %s975_s21 = smov [#allocation5]  }
   0xb   : > { %s1243_s18 = scalar_select %p1033_p4, 1, 0 }
   0xc   : > { %s1244_s19 = scalar_select %p1038_p6, 1, 0 }
   0xd   : > { %p1043_p8 = pnand %p535_p5, %p119_p7  ;;  %s131_s22 = sshll.u32 %s975_s21, 4  ;;  %s1047_s22 = int_to_ptr.vmem [resolvable:$true] %s131_s22 }
   0xe   : > { %s1059_s24 = sadd.s32 1, %s973_s15   ;;  %s27_s25 = sadd.s32 1, %s969_s14 }
   0xf   : > { %s1245_s20 = scalar_select %p1043_p8, 1, 0 }
  0x10   : > { %p785_p9 = pneg %p1043_p8  ;;  %s24_s26 = ssub.s32 %s973_s15, %s1059_s24 }
  0x11   : > { %s845_s29 = scalar_lea.hbm %s1237_s1, 2048 }
  0x12   : > { %p1054_p11 = pnand %p785_p9, %p1240_p1  ;;  %p846_p12 = scmp.ne.s32.totalorder %s1237_s1, %s845_s29 }
  0x13   : > { %p852_p5 = scmp.lt.u32.totalorder %s845_s29, %s1237_s1 }
  0x14   : > { %p847_p13 = pneg %p1054_p11 }
  0x16   : > { %p848_p0 = pnand %p847_p13, %p846_p12 }
  0x18   : > { %p849_p3 = pneg %p848_p0 }
  0x1a   : > { %p854_p7 = pnand %p852_p5, %p849_p3 }
  0x1c   : > { %857 = shalt.err (!%p854_p7)
}
  0x1d   : > { %s858_s7 = scalar_lea.vmem %s1047_s22, 2048  ;;  %p866_p2 = scmp.lt.s32.totalorder %s1047_s22, %s1047_s22 }
  0x1e   : > { %p859_p9 = scmp.ne.s32.totalorder %s1047_s22, %s858_s7  ;;  %p867_p6 = scmp.lt.s32.totalorder %s858_s7, %s858_s7 }
  0x20   : > { %p861_p10 = pnand %p859_p9, %p847_p13  ;;  %p868_p4 = por %p867_p6, %p866_p2 }
  0x22   : > { %p862_p1 = pneg %p861_p10 }
  0x24   : > { %p869_p8 = pnand %p868_p4, %p862_p1 }
  0x26   : > { %872 = shalt.err (!%p869_p8)
}
  0x27   : > { %s976_s8 = smov 128   ;;  %s977_s9 = smov 8  }
  0x28   : > { %788 = dma.hbm_to_vmem [thread:$0]  (!%p1054_p11), %s1237_s1, 2048, %s1047_s22, [#allocation6], %s976_s8, %s976_s8, %s977_s9  }
  0x29   : > { %p25_p2 = scmp.eq.s32.totalorder %s24_s26, 0  ;;  %p34_p1 = scmp.ne.s32.totalorder %s969_s14, %s965_s13 }
  0x2a   : > { %p35_p4 = scmp.eq.s32.totalorder %s973_s15, 0  ;;  %p798_p6 = scmp.lt.s32.totalorder %s973_s15, 2 }
  0x2b   : > { %s1090_s17 = scalar_select %p25_p2, %s969_s14, %s27_s25  }
  0x2c   : > { %p36_p8 = por %p35_p4, %p34_p1  ;;  %p1247_p10 = scmp.eq.s32.totalorder %s1024_s16, 1 }
  0x2d   : > { %s148_s27 = sand.u32 1, %s969_s14   ;;  %s539_s28 = sshll.u32 %s973_s15, 7 }
  0x2e   : > { %p1094_p12 = por %p1247_p10, %p34_p1  ;;  %s538_s29 = sshll.u32 %s148_s27, 3 }
  0x2f   : > { %s1103_s4 = scalar_lea.hbm %s1236_s0, %s539_s28  ;;  %s152_s22 = scalar_lea.vmem [#allocation2], %s538_s29 }
  0x30   : > { %s159_s25 = sshll.u32 %s152_s22, 4  ;;  %p1105_p11 = pnand %p798_p6, %p36_p8  ;;  %s1109_s25 = int_to_ptr.vmem [resolvable:$true] %s159_s25 }
  0x31   : > { %s149_s5 = scalar_lea.sflag [#allocation3], %s148_s27  ;;  %s873_s6 = scalar_lea.hbm %s1103_s4, 128 }
  0x32   : > { %p874_p13 = scmp.ne.s32.totalorder %s1103_s4, %s873_s6  ;;  %p875_p0 = pneg %p1105_p11 }
  0x33   : > { %s878_s9 = scalar_lea.hbm %s1236_s0, 256  ;;  %p879_p7 = scmp.lt.u32.totalorder %s1103_s4, %s1236_s0 }
  0x34   : > { %p876_p3 = pnand %p875_p0, %p874_p13  ;;  %p880_p9 = scmp.lt.u32.totalorder %s878_s9, %s873_s6 }
  0x35   : > { %p882_p1 = scmp.lt.u32.totalorder %s873_s6, %s1103_s4 }
  0x36   : > { %p877_p5 = pneg %p876_p3  ;;  %p881_p2 = por %p880_p9, %p879_p7 }
  0x38   : > { %p883_p4 = por %p882_p1, %p881_p2 }
  0x3a   : > { %p884_p6 = pnand %p883_p4, %p877_p5 }
  0x3c   : > { %887 = shalt.err (!%p884_p6)
}
  0x3d   : > { %s888_s27 = scalar_lea.vmem %s1109_s25, 128  ;;  %s978_s28 = smov [#allocation2]  }
  0x3e   : > { %p889_p8 = scmp.ne.s32.totalorder %s1109_s25, %s888_s27  ;;  %s893_s29 = sshll.u32 %s978_s28, 4  ;;  %s894_s29 = int_to_ptr.vmem [resolvable:$false] %s893_s29 }
  0x3f   : > { %s895_s23 = scalar_lea.vmem %s894_s29, 256  ;;  %p896_p3 = scmp.lt.s32.totalorder %s1109_s25, %s894_s29 }
  0x40   : > { %p891_p10 = pnand %p889_p8, %p875_p0  ;;  %p897_p7 = scmp.lt.s32.totalorder %s895_s23, %s888_s27 }
  0x42   : > { %p892_p13 = pneg %p891_p10  ;;  %p898_p9 = por %p897_p7, %p896_p3 }
  0x44   : > { %p899_p2 = pnand %p898_p9, %p892_p13 }
  0x46   : > { %902 = shalt.err (!%p899_p2)
}
  0x47   : > { %792 = dma.hbm_to_vmem [thread:$0]  (!%p1105_p11), %s1103_s4, 128, %s1109_s25, %s149_s5  }
  0x48   : > { %p1250_p5 = scmp.ne.s32.totalorder %s1245_s20, 0 }
  0x49   : > { %s1139_s30 = sand.u32 (!%p1250_p5), 1, %s965_s13   ;;  %p1251_p0 = scmp.ne.s32.totalorder (!%p1250_p5), %s1243_s18, 0 }
  0x4a   : > { %168 = sbr.rel (%p1250_p5) target bundleno = 810 (0x32a), region = 32  ;;  %s541_s22 = sshll.u32 (!%p1250_p5), %s1139_s30, 3 }
  0x4b   : > { %s171_s6 = scalar_lea.sflag (!%p1250_p5), [#allocation3], %s1139_s30  ;;  %s1145_s7 = scalar_lea.vmem (!%p1250_p5), [#allocation2], %s541_s22 }
  0x51   : > { %948 = dma.done.wait (%p1251_p0), %s171_s6, 128  }
  0x52   : > { %950 = vsyncadd (%p1251_p0), %s171_s6, 4294967168  ;;  %p1252_p11 = scmp.eq.s32.totalorder %s1024_s16, 0 }
  0x54   : > { %952 = dma.done.wait (%p1252_p11), [#allocation6], 2048   ;;  %p1253_p1 = pmov %p1252_p11 }
  0x55   : > { %v979_v0 = vmov 0.0|0.0   ;;  %vm980_vm0 = vmmov 0   ;;  %v981_v1 = vmov 0.0   ;;  %v202_v2 = vld [vmem:[#allocation5] sm:$0xff]  ;;  %v203_v3 = vld [vmem:[#allocation5 + $0x8] sm:$0xff]  ;;  %v204_v4 = vld [vmem:[#allocation5 + $0x10] sm:$0xff] }
  0x56   : > { %954 = vsyncadd (%p1253_p1), [#allocation6], 4294965248  ;;  %705 = vmatprep.subr.bf16.mxu0 %v979_v0  ;;  %632 = vmatprep.mubr.msk.f32.mxu0 %vm980_vm0, %v981_v1  ;;  %v706_v5 = vpack.c.bf16 %v203_v3, %v202_v2  ;;  %v205_v6 = vld [vmem:[#allocation5 + $0x18] sm:$0xff]  ;;  %v206_v8 = vld [vmem:[#allocation5 + $0x20] sm:$0xff]  ;;  %s546_s4 = sshll.u32 %s1024_s16, 7  ;;  %s200_s25 = scalar_lea.vmem [#allocation7], %s541_s22 }
  0x57   : > { %729 = vmatprep.subr.bf16.mxu1 %v979_v0  ;;  %667 = vmatprep.mubr.msk.f32.mxu1 %vm980_vm0, %v981_v1  ;;  %v709_v7 = vpack.c.bf16 %v205_v6, %v204_v4  ;;  %v207_v9 = vld [vmem:[#allocation5 + $0x28] sm:$0xff]  ;;  %v208_v11 = vld [vmem:[#allocation5 + $0x30] sm:$0xff]  ;;  %v209_v12 = vld [vmem:[#allocation5 + $0x38] sm:$0xff]  ;;  %s454_s26 = sshll.u32 %s200_s25, 4  ;;  %s1192_s9 = scalar_lea.hbm %s1239_s3, %s546_s4  ;;  %s1194_s26 = int_to_ptr.vmem [resolvable:$true] %s454_s26 }
  0x58   : > { %707 = vmatpush3.bf16.msra.mxu0 %v706_v5  ;;  %731 = vmatpush3.bf16.msra.mxu1 %v706_v5  ;;  %v712_v10 = vpack.c.bf16 %v207_v9, %v206_v8  ;;  %v715_v13 = vpack.c.bf16 %v209_v12, %v208_v11  ;;  %v210_v14 = vld [vmem:[#allocation5 + $0x40] sm:$0xff]  ;;  %v211_v15 = vld [vmem:[#allocation5 + $0x48] sm:$0xff]  ;;  %v212_v17 = vld [vmem:[#allocation5 + $0x50] sm:$0xff]  ;;  %s441_s10 = scalar_lea.sflag [#allocation4], %s1139_s30  ;;  %s903_s11 = scalar_lea.vmem %s1194_s26, 128 }
  0x59   : > { %708 = vmatprep.subr.bf16.mxu0 %v979_v0  ;;  %732 = vmatprep.subr.bf16.mxu1 %v979_v0  ;;  %v718_v16 = vpack.c.bf16 %v211_v15, %v210_v14  ;;  %v213_v18 = vld [vmem:[#allocation5 + $0x58] sm:$0xff]  ;;  %v214_v20 = vld [vmem:[#allocation5 + $0x60] sm:$0xff]  ;;  %v215_v21 = vld [vmem:[#allocation5 + $0x68] sm:$0xff]  ;;  %p904_p4 = scmp.ne.s32.totalorder %s1194_s26, %s903_s11  ;;  %s982_s16 = smov [#allocation7]  }
  0x5a   : > { %v721_v19 = vpack.c.bf16 %v213_v18, %v212_v17  ;;  %v724_v22 = vpack.c.bf16 %v215_v21, %v214_v20  ;;  %v216_v23 = vld [vmem:[#allocation5 + $0x70] sm:$0xff]  ;;  %v217_v24 = vld [vmem:[#allocation5 + $0x78] sm:$0xff]  ;;  %s907_s27 = sshll.u32 %s982_s16, 4  ;;  %s908_s27 = int_to_ptr.vmem [resolvable:$false] %s907_s27 }
  0x5b   : > { %v727_v25 = vpack.c.bf16 %v217_v24, %v216_v23  ;;  %v201_v26 = vld [vmem:[%s1145_s7] sm:$0xff]  ;;  %p905_p6 = pnand %p904_p4, %p1094_p12  ;;  %s909_s28 = scalar_lea.vmem %s908_s27, 256 }
  0x5c   : > { %710 = vmatpush3.bf16.msra.mxu0 %v709_v7  ;;  %734 = vmatpush3.bf16.msra.mxu1 %v709_v7  ;;  %v544_v27 = vld [vmem:[%s1238_s2] ss:$0 sm:$0xff]  ;;  %p910_p10 = scmp.lt.s32.totalorder %s1194_s26, %s908_s27  ;;  %p911_p13 = scmp.lt.s32.totalorder %s909_s28, %s903_s11 }
  0x5d   : > { %711 = vmatprep.subr.bf16.mxu0 %v979_v0  ;;  %735 = vmatprep.subr.bf16.mxu1 %v979_v0  ;;  %p906_p8 = pneg %p905_p6 }
  0x5e   : > { %p912_p3 = por %p911_p13, %p910_p10 }
  0x60   : > { %713 = vmatpush3.bf16.msra.mxu0 %v712_v10  ;;  %737 = vmatpush3.bf16.msra.mxu1 %v712_v10  ;;  %p913_p7 = pnand %p912_p3, %p906_p8 }
  0x61   : > { %714 = vmatprep.subr.bf16.mxu0 %v979_v0  ;;  %738 = vmatprep.subr.bf16.mxu1 %v979_v0 }
  0x64   : > { %716 = vmatpush3.bf16.msra.mxu0 %v715_v13  ;;  %740 = vmatpush3.bf16.msra.mxu1 %v715_v13 }
  0x65   : > { %717 = vmatprep.subr.bf16.mxu0 %v979_v0  ;;  %741 = vmatprep.subr.bf16.mxu1 %v979_v0 }
  0x68   : > { %719 = vmatpush3.bf16.msra.mxu0 %v718_v16  ;;  %743 = vmatpush3.bf16.msra.mxu1 %v718_v16 }
  0x69   : > { %720 = vmatprep.subr.bf16.mxu0 %v979_v0  ;;  %744 = vmatprep.subr.bf16.mxu1 %v979_v0 }
  0x6c   : > { %722 = vmatpush3.bf16.msra.mxu0 %v721_v19  ;;  %746 = vmatpush3.bf16.msra.mxu1 %v721_v19 }
  0x6d   : > { %723 = vmatprep.subr.bf16.mxu0 %v979_v0  ;;  %747 = vmatprep.subr.bf16.mxu1 %v979_v0 }
  0x70   : > { %725 = vmatpush3.bf16.msra.mxu0 %v724_v22  ;;  %749 = vmatpush3.bf16.msra.mxu1 %v724_v22 }
  0x71   : > { %726 = vmatprep.subr.bf16.mxu0 %v979_v0  ;;  %750 = vmatprep.subr.bf16.mxu1 %v979_v0 }
  0x74   : > { %728 = vmatpush3.bf16.msra.mxu0 %v727_v25  ;;  %752 = vmatpush3.bf16.msra.mxu1 %v727_v25 }
  0x75   : > { %753 = vmatprep.subr.bf16.mxu0 %v979_v0 }
  0x77   : > { %633 = vmatmul.mubr.f32.vlgmr.msra.gmra.mrb[0].mxu0 %v201_v26 }
  0x78   : > { %755 = vmatpush3.bf16.msra.mxu0 %v706_v5  ;;  %702 = vmatprep.mubr.msk.f32.mxu0 %vm980_vm0, %v981_v1 }
  0x79   : > { %756 = vmatprep.subr.bf16.mxu0 %v979_v0 }
  0x7c   : > { %758 = vmatpush3.bf16.msra.mxu0 %v709_v7 }
  0x7d   : > { %759 = vmatprep.subr.bf16.mxu0 %v979_v0 }
  0x80   : > { %761 = vmatpush3.bf16.msra.mxu0 %v712_v10 }
  0x81   : > { %762 = vmatprep.subr.bf16.mxu0 %v979_v0 }
  0x84   : > { %764 = vmatpush3.bf16.msra.mxu0 %v715_v13 }
  0x85   : > { %765 = vmatprep.subr.bf16.mxu0 %v979_v0 }
  0x88   : > { %767 = vmatpush3.bf16.msra.mxu0 %v718_v16 }
  0x89   : > { %768 = vmatprep.subr.bf16.mxu0 %v979_v0 }
  0x8c   : > { %770 = vmatpush3.bf16.msra.mxu0 %v721_v19 }
  0x8d   : > { %771 = vmatprep.subr.bf16.mxu0 %v979_v0 }
  0x90   : > { %773 = vmatpush3.bf16.msra.mxu0 %v724_v22 }
  0x91   : > { %774 = vmatprep.subr.bf16.mxu0 %v979_v0 }
  0x94   : > { %776 = vmatpush3.bf16.msra.mxu0 %v727_v25 }
 0x14a   : > { %v291_v28 = vpop.f32.mrb[0].mxu0 }
 0x14b   : > { %v292_v29 = vadd.f32 %v544_v27, %v291_v28  ;;  %v634_v30 = vpop.f32.mrb[1].mxu0 }
 0x14d   : > { %839 = vtanh.f32 %v292_v29 }
 0x157   : > { %v840_v31 = vpop.eup %839 }
 0x158   : > { %668 = vmatmul.mubr.f32.vlgmr.msra.gmra.mrb[0].mxu1 %v840_v31 }
 0x22b   : > { %v362_v32 = vpop.f32.mrb[0].mxu1 }
 0x22c   : > { %v363_v33 = vadd.f32 %v544_v27, %v362_v32  ;;  %v669_v34 = vpop.f32.mrb[1].mxu1 }
 0x22e   : > { %841 = vtanh.f32 %v363_v33 }
 0x238   : > { %v842_v35 = vpop.eup %841 }
 0x239   : > { %703 = vmatmul.mubr.f32.vlgmr.msra.gmra.mrb[2].mxu0 %v842_v35 }
 0x30c   : > { %v433_v36 = vpop.f32.mrb[2].mxu0 }
 0x30d   : > { %v434_v37 = vadd.f32 %v544_v27, %v433_v36  ;;  %v704_v38 = vpop.f32.mrb[3].mxu0 }
 0x30f   : > { %843 = vtanh.f32 %v434_v37 }
 0x319   : > { %v844_v39 = vpop.eup %843 }
 0x31a   : > { %v438_v40 = vadd.f32 %v844_v39, %v201_v26 }
 0x31c   : > { %439 = vst [vmem:[%s200_s25] sm:$0xff] %v438_v40 }
 0x31d   : > { %916 = shalt.err (!%p913_p7)
}
 0x31e   : > { %s917_s29 = scalar_lea.hbm %s1192_s9, 128  ;;  %s921_s22 = scalar_lea.hbm %s1239_s3, 256 }
 0x31f   : > { %p918_p9 = scmp.ne.s32.totalorder %s1192_s9, %s917_s29  ;;  %p922_p0 = scmp.lt.u32.totalorder %s1192_s9, %s1239_s3 }
 0x320   : > { %p923_p11 = scmp.lt.u32.totalorder %s921_s22, %s917_s29  ;;  %p925_p4 = scmp.lt.u32.totalorder %s917_s29, %s1192_s9 }
 0x321   : > { %p919_p2 = pnand %p918_p9, %p1094_p12 }
 0x322   : > { %p924_p1 = por %p923_p11, %p922_p0 }
 0x323   : > { %p920_p5 = pneg %p919_p2 }
 0x324   : > { %p926_p6 = por %p925_p4, %p924_p1 }
 0x326   : > { %p927_p8 = pnand %p926_p6, %p920_p5 }
 0x328   : > { %930 = shalt.err (!%p927_p8)
}
 0x329   : > { %783 = dma.vmem_to_hbm [thread:$0]  (%p1094_p12), %s1194_s26, 128, %s1192_s9, %s441_s10  }
 0x32a PF: > { %s466_s18 = sand.u32 1, %s961_s12   ;;  %p1254_p10 = scmp.ne.s32.totalorder %s1244_s19, 0 }
 0x32b   : > { %p1255_p13 = scmp.ge.s32.totalorder %s973_s15, 2  ;;  %s467_s20 = scalar_lea.sflag [#allocation4], %s466_s18 }
 0x32d   : > { %p794_p3 = pnand %p1255_p13, %p1254_p10 }
 0x32f   : > { %956 = dma.done.wait (!%p794_p3), %s467_s20, 128  }
 0x330   : > { %958 = vsyncadd (!%p794_p3), %s467_s20, 4294967168  ;;  %p17_p7 = scmp.ge.s32.totalorder %s1059_s24, 4   ;;  %s1256_s12 = smov %s965_s13 }
 0x331   : > { %s1257_s13 = smov %s969_s14  ;;  %s1258_s14 = smov %s1090_s17 }
 0x332   : > { %s1259_s15 = smov %s1059_s24  ;;  %19 = sbr.rel (!%p17_p7) target bundleno = 6 (0x6), region = 81 }
 0x339   :  { %472 = vsyncpa [#allocation3], 1 }
 0x33a   :  { %474 = vsyncpa [#allocation3 + $0x1], 1 }
 0x33b   :  { %475 = vsyncpa [#allocation6], 1 }
 0x33c   :  { %476 = vsyncpa [#allocation4], 1 }
 0x33d   :  { %478 = vsyncpa [#allocation4 + $0x1], 1 }

</bundles_post_ra>
